<compile_context>
chip_gen: v7x
topology: tpu7x:2x2x1
jax: 0.10.0
libtpu: 0.0.40
codegen_flags: <defaults>
</compile_context>

<pallas_src>
import functools

import jax
import jax.numpy as jnp
from jax import lax
from jax.experimental import pallas as pl
from jax.experimental.pallas import tpu as pltpu


def _fused_dilated_stack_kernel(x_ref, *refs, dilation_rates, ksize, cins, couts,
                                pad_max, out_len):
    """Fused [dilated conv1d -> ReLU] x num_layers for one batch element.

    x_ref : (1, Cin0, L)           input in NCL layout (L on lanes, lane-dense)
    refs  : w_0..w_{n-1}           packed weights, each (Cout_l, K*Cin_l), k-major rows
            b_0..b_{n-1}           biases, each (Cout_l, 1)
            o_ref                  (1, Cout_final, L) output
            buf_a, buf_b           (Cbuf, L + 2*pad_max) f32 ping-pong VMEM slabs
    """
    num_layers = len(dilation_rates)
    w_refs = refs[:num_layers]
    b_refs = refs[num_layers:2 * num_layers]
    o_ref = refs[2 * num_layers]
    buf_a = refs[2 * num_layers + 1]
    buf_b = refs[2 * num_layers + 2]

    L = out_len

    # Zero both slabs once: the halo regions provide the 'same' zero padding for every
    # layer and are never written again (only interiors are written below).
    buf_a[...] = jnp.zeros_like(buf_a)
    buf_b[...] = jnp.zeros_like(buf_b)

    # Stage the (Cin0, L) input into the interior of slab A.
    buf_a[0:cins[0], pad_max:pad_max + L] = x_ref[0].astype(jnp.float32)

    bufs = (buf_a, buf_b)
    for i, d in enumerate(dilation_rates):     # static unrolled loop (num_layers is tiny)
        cin = cins[i]
        cout = couts[i]
        cur = bufs[i % 2]

        # Load the padded activation slab once for this layer: (cin, Lp).
        xpad = cur[0:cin, :]

        # im2col: K shifted (cin, L) lane-windows stacked on sublanes -> (K*cin, L).
        # Output position l, tap k reads padded index pad_max + l + (k-1)*d.
        base = pad_max - d
        xcol = jnp.concatenate(
            [lax.slice(xpad, (0, base + k * d), (cin, base + k * d + L))
             for k in range(ksize)],
            axis=0)

        # One MXU contraction per layer: (cout, K*cin) @ (K*cin, L) -> (cout, L).
        acc = jnp.dot(w_refs[i][...], xcol, preferred_element_type=jnp.float32)
        acc = jnp.maximum(acc + b_refs[i][...], 0.0)          # bias + fused ReLU

        if i + 1 < num_layers:
            # Write into the interior of the other slab; halos stay zero.
            bufs[(i + 1) % 2][0:cout, pad_max:pad_max + L] = acc
        else:
            o_ref[0] = acc.astype(o_ref.dtype)                # final layer -> HBM once


def dilated_resnet_block_forward(x_ncl, weights, biases, dilation_rates, ksize):
    """Full module forward.

    x_ncl   : (N, Cin, L)  PyTorch NCL layout
    weights : list of (Cout_l, Cin_l, K) PyTorch Conv1d weights
    biases  : list of (Cout_l,)
    Returns (N, Cout_final, L).
    """
    N, Cin0, L = x_ncl.shape
    num_layers = len(dilation_rates)
    cins = tuple(w.shape[1] for w in weights)
    couts = tuple(w.shape[0] for w in weights)
    cout_final = couts[-1]

    pad_max = max(dilation_rates) * (ksize - 1) // 2
    Lp = L + 2 * pad_max
    cbuf = max(max(cins), max(couts))
    cbuf = ((cbuf + 7) // 8) * 8                              # sublane-align scratch rows

    # Pack weights k-major to match the im2col row order: (Cout, Cin, K) -> (Cout, K*Cin)
    # with packed index [co, k*Cin + ci] = w[co, ci, k].
    w_packed = [jnp.transpose(w, (0, 2, 1)).reshape(w.shape[0], ksize * w.shape[1])
                for w in weights]
    b_packed = [b.reshape(-1, 1) for b in biases]

    kernel = functools.partial(
        _fused_dilated_stack_kernel,
        dilation_rates=tuple(int(d) for d in dilation_rates),
        ksize=ksize, cins=cins, couts=couts, pad_max=pad_max, out_len=L)

    in_specs = [pl.BlockSpec((1, Cin0, L), lambda n: (n, 0, 0))]        # per-batch input
    for w in w_packed:                                                   # resident weights
        in_specs.append(pl.BlockSpec(w.shape, lambda n: (0, 0)))
    for b in b_packed:                                                   # resident biases
        in_specs.append(pl.BlockSpec(b.shape, lambda n: (0, 0)))

    return pl.pallas_call(
        kernel,
        out_shape=jax.ShapeDtypeStruct((N, cout_final, L), x_ncl.dtype),
        grid=(N,),
        in_specs=in_specs,
        out_specs=pl.BlockSpec((1, cout_final, L), lambda n: (n, 0, 0)),
        scratch_shapes=[pltpu.VMEM((cbuf, Lp), jnp.float32),
                        pltpu.VMEM((cbuf, Lp), jnp.float32)],
        compiler_params=pltpu.CompilerParams(
            dimension_semantics=("parallel",)),                # v7x: one TC per batch elem
    )(x_ncl, *w_packed, *b_packed)


def _reference_forward(x_ncl, weights, biases, dilation_rates, ksize):
    """Pure-JAX reference with PyTorch Conv1d('same') semantics."""
    h = x_ncl
    for (w, b), d in zip(zip(weights, biases), dilation_rates):
        pad = d * (ksize - 1) // 2
        h = lax.conv_general_dilated(
            h, w, window_strides=(1,), padding=[(pad, pad)], rhs_dilation=(d,),
            dimension_numbers=("NCH", "OIH", "NCH"))
        h = jnp.maximum(h + b[None, :, None], 0.0)
    return h


def init_params(key, dilation_rates, c_in, c_out, ksize):
    """Deterministic synthetic parameters in PyTorch Conv1d layout (Cout, Cin, K)."""
    weights, biases = [], []
    for l, _ in enumerate(dilation_rates):
        cin_l = c_in if l == 0 else c_out
        key, kw, kb = jax.random.split(key, 3)
        w = jax.random.normal(kw, (c_out, cin_l, ksize), jnp.float32) * 0.2
        b = jax.random.normal(kb, (c_out,), jnp.float32) * 0.05
        weights.append(w)
        biases.append(b)
    return weights, biases


if __name__ == "__main__":
    # Small shapes consistent with the module (1D conv, NCL input).
    batch = 2
    hidden_features_in = 8
    hidden_features_out = 8
    length = 64
    kernel_size = 3
    dilation_rates = (1, 2, 4, 8, 4, 2, 1)

    key = jax.random.PRNGKey(0)
    key, kx = jax.random.split(key)
    x = jax.random.normal(kx, (batch, hidden_features_in, length), jnp.float32)

    weights, biases = init_params(
        key, dilation_rates, hidden_features_in, hidden_features_out, kernel_size)

    out = dilated_resnet_block_forward(x, weights, biases, dilation_rates, kernel_size)
    out = jax.block_until_ready(out)

    ref = _reference_forward(x, weights, biases, dilation_rates, kernel_size)
    assert out.shape == (batch, hidden_features_out, length)
    assert jnp.allclose(out, ref, atol=1e-4, rtol=1e-4), "mismatch vs reference conv"

    print("KERNEL_OK")
</pallas_src>

<mosaic_0001>
module attributes {stable_mosaic.version = 11 : i64} {
  func.func @_fused_dilated_stack_kernel(%arg0: i32, %arg1: memref<1x8x64xf32, #tpu.memory_space<vmem>>, %arg2: memref<8x24xf32, #tpu.memory_space<vmem>>, %arg3: memref<8x24xf32, #tpu.memory_space<vmem>>, %arg4: memref<8x24xf32, #tpu.memory_space<vmem>>, %arg5: memref<8x24xf32, #tpu.memory_space<vmem>>, %arg6: memref<8x24xf32, #tpu.memory_space<vmem>>, %arg7: memref<8x24xf32, #tpu.memory_space<vmem>>, %arg8: memref<8x24xf32, #tpu.memory_space<vmem>>, %arg9: memref<8x1xf32, #tpu.memory_space<vmem>>, %arg10: memref<8x1xf32, #tpu.memory_space<vmem>>, %arg11: memref<8x1xf32, #tpu.memory_space<vmem>>, %arg12: memref<8x1xf32, #tpu.memory_space<vmem>>, %arg13: memref<8x1xf32, #tpu.memory_space<vmem>>, %arg14: memref<8x1xf32, #tpu.memory_space<vmem>>, %arg15: memref<8x1xf32, #tpu.memory_space<vmem>>, %arg16: memref<1x8x64xf32, #tpu.memory_space<vmem>>, %arg17: memref<8x80xf32, #tpu.memory_space<vmem>>, %arg18: memref<8x80xf32, #tpu.memory_space<vmem>>) attributes {dimension_semantics = [#tpu.dimension_semantics<parallel>], iteration_bounds = array<i64: 2>, scalar_prefetch = 0 : i64, scratch_operands = 2 : i64, tpu.core_type = #tpu.core_type<tc>, window_params = [{transform_indices = @transform_0, window_bounds = array<i64: 1, 8, 64>}, {pipeline_mode = #tpu.pipeline_mode<synchronous>, transform_indices = @transform_1, window_bounds = array<i64: 8, 24>}, {pipeline_mode = #tpu.pipeline_mode<synchronous>, transform_indices = @transform_2, window_bounds = array<i64: 8, 24>}, {pipeline_mode = #tpu.pipeline_mode<synchronous>, transform_indices = @transform_3, window_bounds = array<i64: 8, 24>}, {pipeline_mode = #tpu.pipeline_mode<synchronous>, transform_indices = @transform_4, window_bounds = array<i64: 8, 24>}, {pipeline_mode = #tpu.pipeline_mode<synchronous>, transform_indices = @transform_5, window_bounds = array<i64: 8, 24>}, {pipeline_mode = #tpu.pipeline_mode<synchronous>, transform_indices = @transform_6, window_bounds = array<i64: 8, 24>}, {pipeline_mode = #tpu.pipeline_mode<synchronous>, transform_indices = @transform_7, window_bounds = array<i64: 8, 24>}, {pipeline_mode = #tpu.pipeline_mode<synchronous>, transform_indices = @transform_8, window_bounds = array<i64: 8, 1>}, {pipeline_mode = #tpu.pipeline_mode<synchronous>, transform_indices = @transform_9, window_bounds = array<i64: 8, 1>}, {pipeline_mode = #tpu.pipeline_mode<synchronous>, transform_indices = @transform_10, window_bounds = array<i64: 8, 1>}, {pipeline_mode = #tpu.pipeline_mode<synchronous>, transform_indices = @transform_11, window_bounds = array<i64: 8, 1>}, {pipeline_mode = #tpu.pipeline_mode<synchronous>, transform_indices = @transform_12, window_bounds = array<i64: 8, 1>}, {pipeline_mode = #tpu.pipeline_mode<synchronous>, transform_indices = @transform_13, window_bounds = array<i64: 8, 1>}, {pipeline_mode = #tpu.pipeline_mode<synchronous>, transform_indices = @transform_14, window_bounds = array<i64: 8, 1>}, {transform_indices = @transform_15, window_bounds = array<i64: 1, 8, 64>}]} {
    %cst = arith.constant 0.000000e+00 : f32
    %0 = vector.broadcast %cst : f32 to vector<8x80xf32>
    %c0 = arith.constant 0 : index
    %c0_0 = arith.constant 0 : index
    %1 = vector.load %arg17[%c0, %c0_0] : memref<8x80xf32, #tpu.memory_space<vmem>>, vector<8x80xf32>
    tpu.vector_store %arg17[%c0, %c0_0], %0 {strides = array<i32>} : memref<8x80xf32, #tpu.memory_space<vmem>>, vector<8x80xf32>,
    %cst_1 = arith.constant 0.000000e+00 : f32
    %2 = vector.broadcast %cst_1 : f32 to vector<8x80xf32>
    %c0_2 = arith.constant 0 : index
    %c0_3 = arith.constant 0 : index
    %3 = vector.load %arg18[%c0_2, %c0_3] : memref<8x80xf32, #tpu.memory_space<vmem>>, vector<8x80xf32>
    tpu.vector_store %arg18[%c0_2, %c0_3], %2 {strides = array<i32>} : memref<8x80xf32, #tpu.memory_space<vmem>>, vector<8x80xf32>,
    %c0_4 = arith.constant 0 : index
    %c0_5 = arith.constant 0 : index
    %c0_6 = arith.constant 0 : index
    %4 = vector.load %arg1[%c0_4, %c0_5, %c0_6] : memref<1x8x64xf32, #tpu.memory_space<vmem>>, vector<1x8x64xf32>
    %5 = vector.shape_cast %4 : vector<1x8x64xf32> to vector<8x64xf32>
    %c0_7 = arith.constant 0 : index
    %c8 = arith.constant 8 : index
    %6 = vector.load %arg17[%c0_7, %c8] : memref<8x80xf32, #tpu.memory_space<vmem>>, vector<8x64xf32>
    tpu.vector_store %arg17[%c0_7, %c8], %5 {strides = array<i32>} : memref<8x80xf32, #tpu.memory_space<vmem>>, vector<8x64xf32>,
    %c0_8 = arith.constant 0 : index
    %c0_9 = arith.constant 0 : index
    %7 = vector.load %arg17[%c0_8, %c0_9] : memref<8x80xf32, #tpu.memory_space<vmem>>, vector<8x80xf32>
    %8 = vector.extract_strided_slice %7 {offsets = [0, 7], sizes = [8, 64], strides = [1, 1]} : vector<8x80xf32> to vector<8x64xf32>
    %9 = vector.extract_strided_slice %7 {offsets = [0, 8], sizes = [8, 64], strides = [1, 1]} : vector<8x80xf32> to vector<8x64xf32>
    %10 = vector.extract_strided_slice %7 {offsets = [0, 9], sizes = [8, 64], strides = [1, 1]} : vector<8x80xf32> to vector<8x64xf32>
    %11 = tpu.concatenate %8, %9, %10 in 0 : vector<8x64xf32>, vector<8x64xf32>, vector<8x64xf32> -> vector<24x64xf32>
    %c0_10 = arith.constant 0 : index
    %c0_11 = arith.constant 0 : index
    %12 = vector.load %arg2[%c0_10, %c0_11] : memref<8x24xf32, #tpu.memory_space<vmem>>, vector<8x24xf32>
    %cst_12 = arith.constant dense<0.000000e+00> : vector<8x64xf32>
    %13 = tpu.matmul %12, %11, %cst_12 {dimension_numbers = #tpu.dot_dimension_numbers<[1], [0], [0], [1], [0, 0, 1, 1], [], []>} : vector<8x24xf32>, vector<24x64xf32>, vector<8x64xf32> -> vector<8x64xf32>
    %c0_13 = arith.constant 0 : index
    %c0_14 = arith.constant 0 : index
    %14 = vector.load %arg9[%c0_13, %c0_14] : memref<8x1xf32, #tpu.memory_space<vmem>>, vector<8x1xf32>
    %15 = vector.broadcast %14 : vector<8x1xf32> to vector<8x64xf32>
    %16 = arith.addf %13, %15 : vector<8x64xf32>
    %cst_15 = arith.constant 0.000000e+00 : f32
    %17 = vector.broadcast %cst_15 : f32 to vector<8x64xf32>
    %18 = arith.maximumf %16, %17 : vector<8x64xf32>
    %c0_16 = arith.constant 0 : index
    %c8_17 = arith.constant 8 : index
    %19 = vector.load %arg18[%c0_16, %c8_17] : memref<8x80xf32, #tpu.memory_space<vmem>>, vector<8x64xf32>
    tpu.vector_store %arg18[%c0_16, %c8_17], %18 {strides = array<i32>} : memref<8x80xf32, #tpu.memory_space<vmem>>, vector<8x64xf32>,
    %c0_18 = arith.constant 0 : index
    %c0_19 = arith.constant 0 : index
    %20 = vector.load %arg18[%c0_18, %c0_19] : memref<8x80xf32, #tpu.memory_space<vmem>>, vector<8x80xf32>
    %21 = vector.extract_strided_slice %20 {offsets = [0, 6], sizes = [8, 64], strides = [1, 1]} : vector<8x80xf32> to vector<8x64xf32>
    %22 = vector.extract_strided_slice %20 {offsets = [0, 8], sizes = [8, 64], strides = [1, 1]} : vector<8x80xf32> to vector<8x64xf32>
    %23 = vector.extract_strided_slice %20 {offsets = [0, 10], sizes = [8, 64], strides = [1, 1]} : vector<8x80xf32> to vector<8x64xf32>
    %24 = tpu.concatenate %21, %22, %23 in 0 : vector<8x64xf32>, vector<8x64xf32>, vector<8x64xf32> -> vector<24x64xf32>
    %c0_20 = arith.constant 0 : index
    %c0_21 = arith.constant 0 : index
    %25 = vector.load %arg3[%c0_20, %c0_21] : memref<8x24xf32, #tpu.memory_space<vmem>>, vector<8x24xf32>
    %cst_22 = arith.constant dense<0.000000e+00> : vector<8x64xf32>
    %26 = tpu.matmul %25, %24, %cst_22 {dimension_numbers = #tpu.dot_dimension_numbers<[1], [0], [0], [1], [0, 0, 1, 1], [], []>} : vector<8x24xf32>, vector<24x64xf32>, vector<8x64xf32> -> vector<8x64xf32>
    %c0_23 = arith.constant 0 : index
    %c0_24 = arith.constant 0 : index
    %27 = vector.load %arg10[%c0_23, %c0_24] : memref<8x1xf32, #tpu.memory_space<vmem>>, vector<8x1xf32>
    %28 = vector.broadcast %27 : vector<8x1xf32> to vector<8x64xf32>
    %29 = arith.addf %26, %28 : vector<8x64xf32>
    %cst_25 = arith.constant 0.000000e+00 : f32
    %30 = vector.broadcast %cst_25 : f32 to vector<8x64xf32>
    %31 = arith.maximumf %29, %30 : vector<8x64xf32>
    %c0_26 = arith.constant 0 : index
    %c8_27 = arith.constant 8 : index
    %32 = vector.load %arg17[%c0_26, %c8_27] : memref<8x80xf32, #tpu.memory_space<vmem>>, vector<8x64xf32>
    tpu.vector_store %arg17[%c0_26, %c8_27], %31 {strides = array<i32>} : memref<8x80xf32, #tpu.memory_space<vmem>>, vector<8x64xf32>,
    %c0_28 = arith.constant 0 : index
    %c0_29 = arith.constant 0 : index
    %33 = vector.load %arg17[%c0_28, %c0_29] : memref<8x80xf32, #tpu.memory_space<vmem>>, vector<8x80xf32>
    %34 = vector.extract_strided_slice %33 {offsets = [0, 4], sizes = [8, 64], strides = [1, 1]} : vector<8x80xf32> to vector<8x64xf32>
    %35 = vector.extract_strided_slice %33 {offsets = [0, 8], sizes = [8, 64], strides = [1, 1]} : vector<8x80xf32> to vector<8x64xf32>
    %36 = vector.extract_strided_slice %33 {offsets = [0, 12], sizes = [8, 64], strides = [1, 1]} : vector<8x80xf32> to vector<8x64xf32>
    %37 = tpu.concatenate %34, %35, %36 in 0 : vector<8x64xf32>, vector<8x64xf32>, vector<8x64xf32> -> vector<24x64xf32>
    %c0_30 = arith.constant 0 : index
    %c0_31 = arith.constant 0 : index
    %38 = vector.load %arg4[%c0_30, %c0_31] : memref<8x24xf32, #tpu.memory_space<vmem>>, vector<8x24xf32>
    %cst_32 = arith.constant dense<0.000000e+00> : vector<8x64xf32>
    %39 = tpu.matmul %38, %37, %cst_32 {dimension_numbers = #tpu.dot_dimension_numbers<[1], [0], [0], [1], [0, 0, 1, 1], [], []>} : vector<8x24xf32>, vector<24x64xf32>, vector<8x64xf32> -> vector<8x64xf32>
    %c0_33 = arith.constant 0 : index
    %c0_34 = arith.constant 0 : index
    %40 = vector.load %arg11[%c0_33, %c0_34] : memref<8x1xf32, #tpu.memory_space<vmem>>, vector<8x1xf32>
    %41 = vector.broadcast %40 : vector<8x1xf32> to vector<8x64xf32>
    %42 = arith.addf %39, %41 : vector<8x64xf32>
    %cst_35 = arith.constant 0.000000e+00 : f32
    %43 = vector.broadcast %cst_35 : f32 to vector<8x64xf32>
    %44 = arith.maximumf %42, %43 : vector<8x64xf32>
    %c0_36 = arith.constant 0 : index
    %c8_37 = arith.constant 8 : index
    %45 = vector.load %arg18[%c0_36, %c8_37] : memref<8x80xf32, #tpu.memory_space<vmem>>, vector<8x64xf32>
    tpu.vector_store %arg18[%c0_36, %c8_37], %44 {strides = array<i32>} : memref<8x80xf32, #tpu.memory_space<vmem>>, vector<8x64xf32>,
    %c0_38 = arith.constant 0 : index
    %c0_39 = arith.constant 0 : index
    %46 = vector.load %arg18[%c0_38, %c0_39] : memref<8x80xf32, #tpu.memory_space<vmem>>, vector<8x80xf32>
    %47 = vector.extract_strided_slice %46 {offsets = [0, 0], sizes = [8, 64], strides = [1, 1]} : vector<8x80xf32> to vector<8x64xf32>
    %48 = vector.extract_strided_slice %46 {offsets = [0, 8], sizes = [8, 64], strides = [1, 1]} : vector<8x80xf32> to vector<8x64xf32>
    %49 = vector.extract_strided_slice %46 {offsets = [0, 16], sizes = [8, 64], strides = [1, 1]} : vector<8x80xf32> to vector<8x64xf32>
    %50 = tpu.concatenate %47, %48, %49 in 0 : vector<8x64xf32>, vector<8x64xf32>, vector<8x64xf32> -> vector<24x64xf32>
    %c0_40 = arith.constant 0 : index
    %c0_41 = arith.constant 0 : index
    %51 = vector.load %arg5[%c0_40, %c0_41] : memref<8x24xf32, #tpu.memory_space<vmem>>, vector<8x24xf32>
    %cst_42 = arith.constant dense<0.000000e+00> : vector<8x64xf32>
    %52 = tpu.matmul %51, %50, %cst_42 {dimension_numbers = #tpu.dot_dimension_numbers<[1], [0], [0], [1], [0, 0, 1, 1], [], []>} : vector<8x24xf32>, vector<24x64xf32>, vector<8x64xf32> -> vector<8x64xf32>
    %c0_43 = arith.constant 0 : index
    %c0_44 = arith.constant 0 : index
    %53 = vector.load %arg12[%c0_43, %c0_44] : memref<8x1xf32, #tpu.memory_space<vmem>>, vector<8x1xf32>
    %54 = vector.broadcast %53 : vector<8x1xf32> to vector<8x64xf32>
    %55 = arith.addf %52, %54 : vector<8x64xf32>
    %cst_45 = arith.constant 0.000000e+00 : f32
    %56 = vector.broadcast %cst_45 : f32 to vector<8x64xf32>
    %57 = arith.maximumf %55, %56 : vector<8x64xf32>
    %c0_46 = arith.constant 0 : index
    %c8_47 = arith.constant 8 : index
    %58 = vector.load %arg17[%c0_46, %c8_47] : memref<8x80xf32, #tpu.memory_space<vmem>>, vector<8x64xf32>
    tpu.vector_store %arg17[%c0_46, %c8_47], %57 {strides = array<i32>} : memref<8x80xf32, #tpu.memory_space<vmem>>, vector<8x64xf32>,
    %c0_48 = arith.constant 0 : index
    %c0_49 = arith.constant 0 : index
    %59 = vector.load %arg17[%c0_48, %c0_49] : memref<8x80xf32, #tpu.memory_space<vmem>>, vector<8x80xf32>
    %60 = vector.extract_strided_slice %59 {offsets = [0, 4], sizes = [8, 64], strides = [1, 1]} : vector<8x80xf32> to vector<8x64xf32>
    %61 = vector.extract_strided_slice %59 {offsets = [0, 8], sizes = [8, 64], strides = [1, 1]} : vector<8x80xf32> to vector<8x64xf32>
    %62 = vector.extract_strided_slice %59 {offsets = [0, 12], sizes = [8, 64], strides = [1, 1]} : vector<8x80xf32> to vector<8x64xf32>
    %63 = tpu.concatenate %60, %61, %62 in 0 : vector<8x64xf32>, vector<8x64xf32>, vector<8x64xf32> -> vector<24x64xf32>
    %c0_50 = arith.constant 0 : index
    %c0_51 = arith.constant 0 : index
    %64 = vector.load %arg6[%c0_50, %c0_51] : memref<8x24xf32, #tpu.memory_space<vmem>>, vector<8x24xf32>
    %cst_52 = arith.constant dense<0.000000e+00> : vector<8x64xf32>
    %65 = tpu.matmul %64, %63, %cst_52 {dimension_numbers = #tpu.dot_dimension_numbers<[1], [0], [0], [1], [0, 0, 1, 1], [], []>} : vector<8x24xf32>, vector<24x64xf32>, vector<8x64xf32> -> vector<8x64xf32>
    %c0_53 = arith.constant 0 : index
    %c0_54 = arith.constant 0 : index
    %66 = vector.load %arg13[%c0_53, %c0_54] : memref<8x1xf32, #tpu.memory_space<vmem>>, vector<8x1xf32>
    %67 = vector.broadcast %66 : vector<8x1xf32> to vector<8x64xf32>
    %68 = arith.addf %65, %67 : vector<8x64xf32>
    %cst_55 = arith.constant 0.000000e+00 : f32
    %69 = vector.broadcast %cst_55 : f32 to vector<8x64xf32>
    %70 = arith.maximumf %68, %69 : vector<8x64xf32>
    %c0_56 = arith.constant 0 : index
    %c8_57 = arith.constant 8 : index
    %71 = vector.load %arg18[%c0_56, %c8_57] : memref<8x80xf32, #tpu.memory_space<vmem>>, vector<8x64xf32>
    tpu.vector_store %arg18[%c0_56, %c8_57], %70 {strides = array<i32>} : memref<8x80xf32, #tpu.memory_space<vmem>>, vector<8x64xf32>,
    %c0_58 = arith.constant 0 : index
    %c0_59 = arith.constant 0 : index
    %72 = vector.load %arg18[%c0_58, %c0_59] : memref<8x80xf32, #tpu.memory_space<vmem>>, vector<8x80xf32>
    %73 = vector.extract_strided_slice %72 {offsets = [0, 6], sizes = [8, 64], strides = [1, 1]} : vector<8x80xf32> to vector<8x64xf32>
    %74 = vector.extract_strided_slice %72 {offsets = [0, 8], sizes = [8, 64], strides = [1, 1]} : vector<8x80xf32> to vector<8x64xf32>
    %75 = vector.extract_strided_slice %72 {offsets = [0, 10], sizes = [8, 64], strides = [1, 1]} : vector<8x80xf32> to vector<8x64xf32>
    %76 = tpu.concatenate %73, %74, %75 in 0 : vector<8x64xf32>, vector<8x64xf32>, vector<8x64xf32> -> vector<24x64xf32>
    %c0_60 = arith.constant 0 : index
    %c0_61 = arith.constant 0 : index
    %77 = vector.load %arg7[%c0_60, %c0_61] : memref<8x24xf32, #tpu.memory_space<vmem>>, vector<8x24xf32>
    %cst_62 = arith.constant dense<0.000000e+00> : vector<8x64xf32>
    %78 = tpu.matmul %77, %76, %cst_62 {dimension_numbers = #tpu.dot_dimension_numbers<[1], [0], [0], [1], [0, 0, 1, 1], [], []>} : vector<8x24xf32>, vector<24x64xf32>, vector<8x64xf32> -> vector<8x64xf32>
    %c0_63 = arith.constant 0 : index
    %c0_64 = arith.constant 0 : index
    %79 = vector.load %arg14[%c0_63, %c0_64] : memref<8x1xf32, #tpu.memory_space<vmem>>, vector<8x1xf32>
    %80 = vector.broadcast %79 : vector<8x1xf32> to vector<8x64xf32>
    %81 = arith.addf %78, %80 : vector<8x64xf32>
    %cst_65 = arith.constant 0.000000e+00 : f32
    %82 = vector.broadcast %cst_65 : f32 to vector<8x64xf32>
    %83 = arith.maximumf %81, %82 : vector<8x64xf32>
    %c0_66 = arith.constant 0 : index
    %c8_67 = arith.constant 8 : index
    %84 = vector.load %arg17[%c0_66, %c8_67] : memref<8x80xf32, #tpu.memory_space<vmem>>, vector<8x64xf32>
    tpu.vector_store %arg17[%c0_66, %c8_67], %83 {strides = array<i32>} : memref<8x80xf32, #tpu.memory_space<vmem>>, vector<8x64xf32>,
    %c0_68 = arith.constant 0 : index
    %c0_69 = arith.constant 0 : index
    %85 = vector.load %arg17[%c0_68, %c0_69] : memref<8x80xf32, #tpu.memory_space<vmem>>, vector<8x80xf32>
    %86 = vector.extract_strided_slice %85 {offsets = [0, 7], sizes = [8, 64], strides = [1, 1]} : vector<8x80xf32> to vector<8x64xf32>
    %87 = vector.extract_strided_slice %85 {offsets = [0, 8], sizes = [8, 64], strides = [1, 1]} : vector<8x80xf32> to vector<8x64xf32>
    %88 = vector.extract_strided_slice %85 {offsets = [0, 9], sizes = [8, 64], strides = [1, 1]} : vector<8x80xf32> to vector<8x64xf32>
    %89 = tpu.concatenate %86, %87, %88 in 0 : vector<8x64xf32>, vector<8x64xf32>, vector<8x64xf32> -> vector<24x64xf32>
    %c0_70 = arith.constant 0 : index
    %c0_71 = arith.constant 0 : index
    %90 = vector.load %arg8[%c0_70, %c0_71] : memref<8x24xf32, #tpu.memory_space<vmem>>, vector<8x24xf32>
    %cst_72 = arith.constant dense<0.000000e+00> : vector<8x64xf32>
    %91 = tpu.matmul %90, %89, %cst_72 {dimension_numbers = #tpu.dot_dimension_numbers<[1], [0], [0], [1], [0, 0, 1, 1], [], []>} : vector<8x24xf32>, vector<24x64xf32>, vector<8x64xf32> -> vector<8x64xf32>
    %c0_73 = arith.constant 0 : index
    %c0_74 = arith.constant 0 : index
    %92 = vector.load %arg15[%c0_73, %c0_74] : memref<8x1xf32, #tpu.memory_space<vmem>>, vector<8x1xf32>
    %93 = vector.broadcast %92 : vector<8x1xf32> to vector<8x64xf32>
    %94 = arith.addf %91, %93 : vector<8x64xf32>
    %cst_75 = arith.constant 0.000000e+00 : f32
    %95 = vector.broadcast %cst_75 : f32 to vector<8x64xf32>
    %96 = arith.maximumf %94, %95 : vector<8x64xf32>
    %c0_76 = arith.constant 0 : index
    %c0_77 = arith.constant 0 : index
    %c0_78 = arith.constant 0 : index
    %97 = vector.load %arg16[%c0_76, %c0_77, %c0_78] : memref<1x8x64xf32, #tpu.memory_space<vmem>>, vector<1x8x64xf32>
    %98 = vector.shape_cast %97 : vector<1x8x64xf32> to vector<8x64xf32>
    %99 = vector.shape_cast %96 : vector<8x64xf32> to vector<1x8x64xf32>
    tpu.vector_store %arg16[%c0_76, %c0_77, %c0_78], %99 {strides = array<i32>} : memref<1x8x64xf32, #tpu.memory_space<vmem>>, vector<1x8x64xf32>,
    return
  }
  func.func @transform_0(%arg0: i32) -> (i32, i32, i32) {
    %c0_i32 = arith.constant 0 : i32
    %c0_i32_0 = arith.constant 0 : i32
    %c0_i32_1 = arith.constant 0 : i32
    return %arg0, %c0_i32, %c0_i32_0 : i32, i32, i32
  }
  func.func @transform_1(%arg0: i32) -> (i32, i32) {
    %c0_i32 = arith.constant 0 : i32
    %c0_i32_0 = arith.constant 0 : i32
    %c0_i32_1 = arith.constant 0 : i32
    return %c0_i32, %c0_i32_0 : i32, i32
  }
  func.func @transform_2(%arg0: i32) -> (i32, i32) {
    %c0_i32 = arith.constant 0 : i32
    %c0_i32_0 = arith.constant 0 : i32
    %c0_i32_1 = arith.constant 0 : i32
    return %c0_i32, %c0_i32_0 : i32, i32
  }
  func.func @transform_3(%arg0: i32) -> (i32, i32) {
    %c0_i32 = arith.constant 0 : i32
    %c0_i32_0 = arith.constant 0 : i32
    %c0_i32_1 = arith.constant 0 : i32
    return %c0_i32, %c0_i32_0 : i32, i32
  }
  func.func @transform_4(%arg0: i32) -> (i32, i32) {
    %c0_i32 = arith.constant 0 : i32
    %c0_i32_0 = arith.constant 0 : i32
    %c0_i32_1 = arith.constant 0 : i32
    return %c0_i32, %c0_i32_0 : i32, i32
  }
  func.func @transform_5(%arg0: i32) -> (i32, i32) {
    %c0_i32 = arith.constant 0 : i32
    %c0_i32_0 = arith.constant 0 : i32
    %c0_i32_1 = arith.constant 0 : i32
    return %c0_i32, %c0_i32_0 : i32, i32
  }
  func.func @transform_6(%arg0: i32) -> (i32, i32) {
    %c0_i32 = arith.constant 0 : i32
    %c0_i32_0 = arith.constant 0 : i32
    %c0_i32_1 = arith.constant 0 : i32
    return %c0_i32, %c0_i32_0 : i32, i32
  }
  func.func @transform_7(%arg0: i32) -> (i32, i32) {
    %c0_i32 = arith.constant 0 : i32
    %c0_i32_0 = arith.constant 0 : i32
    %c0_i32_1 = arith.constant 0 : i32
    return %c0_i32, %c0_i32_0 : i32, i32
  }
  func.func @transform_8(%arg0: i32) -> (i32, i32) {
    %c0_i32 = arith.constant 0 : i32
    %c0_i32_0 = arith.constant 0 : i32
    %c0_i32_1 = arith.constant 0 : i32
    return %c0_i32, %c0_i32_0 : i32, i32
  }
  func.func @transform_9(%arg0: i32) -> (i32, i32) {
    %c0_i32 = arith.constant 0 : i32
    %c0_i32_0 = arith.constant 0 : i32
    %c0_i32_1 = arith.constant 0 : i32
    return %c0_i32, %c0_i32_0 : i32, i32
  }
  func.func @transform_10(%arg0: i32) -> (i32, i32) {
    %c0_i32 = arith.constant 0 : i32
    %c0_i32_0 = arith.constant 0 : i32
    %c0_i32_1 = arith.constant 0 : i32
    return %c0_i32, %c0_i32_0 : i32, i32
  }
  func.func @transform_11(%arg0: i32) -> (i32, i32) {
    %c0_i32 = arith.constant 0 : i32
    %c0_i32_0 = arith.constant 0 : i32
    %c0_i32_1 = arith.constant 0 : i32
    return %c0_i32, %c0_i32_0 : i32, i32
  }
  func.func @transform_12(%arg0: i32) -> (i32, i32) {
    %c0_i32 = arith.constant 0 : i32
    %c0_i32_0 = arith.constant 0 : i32
    %c0_i32_1 = arith.constant 0 : i32
    return %c0_i32, %c0_i32_0 : i32, i32
  }
  func.func @transform_13(%arg0: i32) -> (i32, i32) {
    %c0_i32 = arith.constant 0 : i32
    %c0_i32_0 = arith.constant 0 : i32
    %c0_i32_1 = arith.constant 0 : i32
    return %c0_i32, %c0_i32_0 : i32, i32
  }
  func.func @transform_14(%arg0: i32) -> (i32, i32) {
    %c0_i32 = arith.constant 0 : i32
    %c0_i32_0 = arith.constant 0 : i32
    %c0_i32_1 = arith.constant 0 : i32
    return %c0_i32, %c0_i32_0 : i32, i32
  }
  func.func @transform_15(%arg0: i32) -> (i32, i32, i32) {
    %c0_i32 = arith.constant 0 : i32
    %c0_i32_0 = arith.constant 0 : i32
    %c0_i32_1 = arith.constant 0 : i32
    return %arg0, %c0_i32, %c0_i32_0 : i32, i32, i32
  }
}

</mosaic_0001>

<bundles_post_ra>
// kernel: tpu_custom_call.1
= control target key start
LH: loop header
LB: loop body
LE: loop exit
PB: predicated region body
PF: predicated region fallthrough
CT: control target
= control target key end

     0   :  { %s1844_s0 = inlined_call_operand.vmem [shape: f32[2,8,64], index: 0, kind: input, shape index: {}]   ;;  %s1845_s1 = inlined_call_operand.vmem [shape: f32[8,24], index: 1, kind: input, shape index: {}]   ;;  %s1846_s2 = inlined_call_operand.vmem [shape: f32[8,24], index: 2, kind: input, shape index: {}]   ;;  %s1847_s3 = inlined_call_operand.vmem [shape: f32[8,24], index: 3, kind: input, shape index: {}]   ;;  %s1848_s4 = inlined_call_operand.vmem [shape: f32[8,24], index: 4, kind: input, shape index: {}]   ;;  %s1849_s5 = inlined_call_operand.vmem [shape: f32[8,24], index: 5, kind: input, shape index: {}]   ;;  %s1850_s6 = inlined_call_operand.vmem [shape: f32[8,24], index: 6, kind: input, shape index: {}]   ;;  %s1851_s7 = inlined_call_operand.vmem [shape: f32[8,24], index: 7, kind: input, shape index: {}]   ;;  %s1852_s8 = inlined_call_operand.vmem [shape: f32[8,1], index: 8, kind: input, shape index: {}]   ;;  %s1853_s9 = inlined_call_operand.vmem [shape: f32[8,1], index: 9, kind: input, shape index: {}]   ;;  %s1854_s10 = inlined_call_operand.vmem [shape: f32[8,1], index: 10, kind: input, shape index: {}]   ;;  %s1855_s11 = inlined_call_operand.vmem [shape: f32[8,1], index: 11, kind: input, shape index: {}]   ;;  %s1856_s12 = inlined_call_operand.vmem [shape: f32[8,1], index: 12, kind: input, shape index: {}]   ;;  %s1857_s13 = inlined_call_operand.vmem [shape: f32[8,1], index: 13, kind: input, shape index: {}]   ;;  %s1858_s14 = inlined_call_operand.vmem [shape: f32[8,1], index: 14, kind: input, shape index: {}]   ;;  %s1859_s15 = inlined_call_operand.hbm [shape: f32[2,8,64], index: 15, kind: output, shape index: {}]  }
   0x1   :  { %1868 = sst [smem:[#allocation9_spill]] %s1844_s0 }
   0x2   :  { %1869 = sst [smem:[#allocation10_spill]] %s1845_s1 }
   0x3   :  { %1870 = sst [smem:[#allocation11_spill]] %s1846_s2 }
   0x4   :  { %20 = vsyncpa [#allocation5], 0 }
   0x5   :  { %22 = vsyncpa [#allocation5 + $0x1], 0  ;;  %s1626_s18 = smov 0   ;;  %s1628_s19 = smov 0  }
   0x6   :  { %s1630_s20 = smov 0   ;;  %s1632_s21 = smov 0  }
   0x7 LB: > { %1871 = sst [smem:[#allocation7_spill]] %s1527_s20  ;;  %s1647_s22 = sadd.s32 4294967295, %s1531_s21   ;;  %s1531_s21 = sphi %s1632_s21, %s1886_s21   ;;  %s1527_s20 = sphi %s1630_s20, %s1883_s20   ;;  %s1523_s19 = sphi %s1628_s19, %s1885_s19   ;;  %s1519_s18 = sphi %s1626_s18, %s1884_s18  }
   0x8   : > { %s1267_s23 = sadd.s32 4294967294, %s1531_s21   ;;  %s1651_s24 = sadd.s32 1, %s1531_s21  }
   0x9   : > { %s355_s25 = sadd.s32 1, %s1527_s20  ;;  %s352_s26 = ssub.s32 %s1531_s21, %s1651_s24 }
   0xa   : > { %p365_p0 = scmp.ne.s32.totalorder %s1527_s20, %s1523_s19  ;;  %p353_p1 = scmp.eq.s32.totalorder %s352_s26, 0 }
   0xb   : > { %p366_p2 = scmp.eq.s32.totalorder %s1647_s22, 1  ;;  %p371_p3 = scmp.ne.s32.totalorder %s1523_s19, %s1519_s18 }
   0xc   : > { %p372_p4 = scmp.eq.s32.totalorder %s1267_s23, 1  ;;  %p1270_p7 = scmp.ge.s32.totalorder %s1531_s21, 1 }
   0xd   : > { %s1662_s27 = scalar_select %p353_p1, %s1527_s20, %s355_s25  }
   0xe   : > { %p1664_p5 = por %p366_p2, %p365_p0  ;;  %p1668_p6 = por %p372_p4, %p371_p3 }
   0xf   : > { %1872 = sst [smem:[#allocation8_spill]] %s1662_s27  ;;  %p439_p8 = scmp.lt.s32.totalorder %s1531_s21, 3 }
  0x11   : > { %p440_p9 = pnand %p1270_p7, %p439_p8 }
  0x12   : > { %p486_p10 = scmp.lt.s32.totalorder (!%p440_p9), %s1647_s22, 1  ;;  %vm490_vm0 = vcmask (!%p440_p9), 654336   ;;  %v1533_v0 = vmov (!%p440_p9), 0.0   ;;  %s1875_s0 = sld [smem:[#allocation9_spill]] (!%p440_p9)  ;;  %vm498_vm1 = vcmask (!%p440_p9), 588864   ;;  %v1537_v4 = vmov (!%p440_p9), 0.0|0.0  }
  0x13   : > { %443 = sbr.rel (%p440_p9) target bundleno = 3978 (0xf8a), region = 80  ;;  %491 = vst.msk [vmem:[#allocation2] sm:$0xff] (!%p440_p9), %vm490_vm0, %v1533_v0  ;;  %492 = vst.msk [vmem:[#allocation3] sm:$0xff] (!%p440_p9), %vm490_vm0, %v1533_v0  ;;  %s1534_s26 = smov (!%p440_p9), 8   ;;  %1375 = vmatprep.subr.bf16.mxu0 (!%p440_p9), %v1537_v4  ;;  %1378 = vmatprep.subr.bf16.mxu1 (!%p440_p9), %v1537_v4  ;;  %vm1538_vm2 = vmmov (!%p440_p9), 0   ;;  %v1539_v7 = vmov (!%p440_p9), 0  }
  0x14   : > { %s1866_s27 = smov (!%p440_p9), 126   ;;  %s1863_s20 = smov (!%p440_p9), 127   ;;  %1318 = vmatprep.mubr.msk.f32.mxu0 (!%p440_p9), %vm1538_vm2, %v1533_v0  ;;  %1327 = vmatprep.mubr.msk.f32.mxu1 (!%p440_p9), %vm1538_vm2, %v1533_v0  ;;  %v507_v9 = vld [vmem:[%s1852_s8] sm:$0xff] (!%p440_p9)  ;;  %vm522_vm3 = vcmask (!%p440_p9), 195584   ;;  %vm1192_vm4 = vcmask (!%p440_p9), 523264  }
  0x15   : > { %1452 = vset.pattern.permute.xlu1 (!%p440_p9), %v1539_v7  ;;  %1468 = vset.pattern.permute.xlu0 (!%p440_p9), %v1539_v7  ;;  %s1876_s1 = sld [smem:[#allocation10_spill]] (!%p440_p9)  ;;  %s1864_s17 = smov (!%p440_p9), 122   ;;  %v609_v26 = vld [vmem:[%s1853_s9] sm:$0xff] (!%p440_p9) }
  0x16   : > { %s1877_s2 = sld [smem:[#allocation11_spill]] (!%p440_p9)  ;;  %v710_v42 = vld [vmem:[%s1854_s10] sm:$0xff] (!%p440_p9)  ;;  %s1878_s23 = smov (!%p440_p9), 126  }
  0x17   : > { %v709_v45 = vld [vmem:[%s1847_s3] sm:$0xff] (!%p440_p9) }
  0x18   : > { %v811_v54 = vld [vmem:[%s1855_s11] sm:$0xff] (!%p440_p9) }
  0x19   : > { %v810_v57 = vld [vmem:[%s1848_s4] sm:$0xff] (!%p440_p9) }
  0x1a   : > { %s487_s30 = scalar_select %p486_p10, %s1647_s22, 1 }
  0x1b   : > { %v506_v14 = vld [vmem:[%s1876_s1] sm:$0xff] }
  0x1c   : > { %s1272_s16 = sshll.u32 %s487_s30, 3  ;;  %s1861_s30 = smov 121   ;;  %v608_v31 = vld [vmem:[%s1877_s2] sm:$0xff] }
  0x1d   : > { %s489_s25 = scalar_lea.vmem %s1875_s0, %s1272_s16  ;;  %s1541_s16 = smov 124  }
  0x1e   : > { %v493_v1 = vld [vmem:[%s489_s25] sm:$0xff]  ;;  %s1879_s25 = smov 122  }
  0x1f   : > { %495 = vrot.lane.b32.xlu0 %v493_v1, %s1534_s26 }
  0x91   : > { %v496_v2 = vpop.permute.xlu0 %495 }
  0x92   : > { %499 = vst.msk [vmem:[#allocation2] sm:$0xff] %vm498_vm1, %v496_v2 }
  0x99   : > { %v500_v3 = vld [vmem:[#allocation2] sm:$0xff] }
  0x9a   : > { %504 = vrot.lane.b32.xlu1 %v500_v3, %s1866_s27  ;;  %502 = vrot.lane.b32.xlu0 %v500_v3, %s1863_s20  ;;  %s1543_s20 = smov 120  }
 0x10c   : > { %v505_v5 = vpop.permute.xlu1 %504  ;;  %v503_v6 = vpop.permute.xlu0 %502 }
 0x10d   : > { %v1447_v8 = vpack.i.bf16 %v503_v6, %v500_v3  ;;  %517 = vrot.lane.b32.xlu0 %v505_v5, %s1861_s30  ;;  %v903_v6 = vld [vmem:[%s1856_s12] sm:$0xff] }
 0x10f   : > { %1448 = vrot.lane.b32.xlu1 %v1447_v8, %s1861_s30 }
 0x113   : > { %510 = vperm.xlu1 %1452, %v507_v9   ;;  %v902_v9 = vld [vmem:[%s1849_s5] sm:$0xff] }
 0x17f   : > { %v518_v15 = vpop.permute.xlu0 %517 }
 0x181   : > { %v1449_v10 = vpop.permute.xlu1 %1448 }
 0x182   : > { %v1451_v11 = vunpack.i.h.bf16 %v1449_v10  ;;  %v1450_v12 = vunpack.i.l.bf16 %v1449_v10 }
 0x184   : > { %v1376_v13 = vpack.c.bf16 %v1451_v11, %v1450_v12 }
 0x186   : > { %1377 = vmatpush3.bf16.msra.mxu0 %v1376_v13 }
 0x187   : > { %1316 = vmatprep.subr.mxu0 %v1533_v0 }
 0x18a   : > { %1317 = vmatpush3.msra.mxu0 %v518_v15 }
 0x18b   : > { %1319 = vmatmul.mubr.msk.f32.vlgmr.msra.gmra.mrb[0].mxu0 %vm522_vm3, %v506_v14  ;;  %1381 = vmatprep.subr.bf16.mxu0 %v1537_v4 }
 0x18c   : > { %1336 = vmatprep.mubr.msk.f32.mxu0 %vm1538_vm2, %v1533_v0 }
 0x192   : > { %v511_v16 = vpop.permute.xlu1 %510 }
 0x25e   : > { %v592_v17 = vpop.f32.mrb[0].mxu0 }
 0x25f   : > { %v593_v18 = vadd.f32 %v592_v17, %v511_v16  ;;  %v1320_v19 = vpop.f32.mrb[1].mxu0 }
 0x261   : > { %v596_v20 = vmax.f32 %v593_v18, 0.0 }
 0x263   : > { %598 = vrot.lane.b32.xlu0 %v596_v20, %s1534_s26  ;;  %v1002_v20 = vld [vmem:[%s1857_s13] sm:$0xff] }
 0x2d5   : > { %v599_v21 = vpop.permute.xlu0 %598 }
 0x2d6   : > { %601 = vst.msk [vmem:[#allocation3] sm:$0xff] %vm498_vm1, %v599_v21 }
 0x2dd   : > { %v602_v22 = vld [vmem:[#allocation3] sm:$0xff] }
 0x2de   : > { %606 = vrot.lane.b32.xlu0 %v602_v22, %s1541_s16  ;;  %604 = vrot.lane.b32.xlu1 %v602_v22, %s1866_s27 }
 0x350   : > { %v607_v23 = vpop.permute.xlu0 %606  ;;  %v605_v24 = vpop.permute.xlu1 %604 }
 0x351   : > { %v1453_v25 = vpack.i.bf16 %v605_v24, %v602_v22  ;;  %619 = vrot.lane.b32.xlu0 %v607_v23, %s1864_s17 }
 0x353   : > { %1454 = vrot.lane.b32.xlu1 %v1453_v25, %s1864_s17  ;;  %s1544_s17 = smov 112   ;;  %v1001_v25 = vld [vmem:[%s1850_s6] sm:$0xff] }
 0x357   : > { %612 = vperm.xlu1 %1452, %v609_v26  }
 0x3c3   : > { %v620_v32 = vpop.permute.xlu0 %619 }
 0x3c5   : > { %v1455_v27 = vpop.permute.xlu1 %1454 }
 0x3c6   : > { %v1457_v28 = vunpack.i.h.bf16 %v1455_v27  ;;  %v1456_v29 = vunpack.i.l.bf16 %v1455_v27 }
 0x3c8   : > { %v1379_v30 = vpack.c.bf16 %v1457_v28, %v1456_v29 }
 0x3ca   : > { %1380 = vmatpush3.bf16.msra.mxu1 %v1379_v30 }
 0x3cb   : > { %1325 = vmatprep.subr.mxu1 %v1533_v0 }
 0x3ce   : > { %1326 = vmatpush3.msra.mxu1 %v620_v32 }
 0x3cf   : > { %1328 = vmatmul.mubr.msk.f32.vlgmr.msra.gmra.mrb[0].mxu1 %vm522_vm3, %v608_v31  ;;  %1384 = vmatprep.subr.bf16.mxu1 %v1537_v4 }
 0x3d0   : > { %1345 = vmatprep.mubr.msk.f32.mxu1 %vm1538_vm2, %v1533_v0 }
 0x3d6   : > { %v613_v33 = vpop.permute.xlu1 %612 }
 0x4a2   : > { %v693_v34 = vpop.f32.mrb[0].mxu1 }
 0x4a3   : > { %v694_v35 = vadd.f32 %v693_v34, %v613_v33  ;;  %v1329_v36 = vpop.f32.mrb[1].mxu1 }
 0x4a5   : > { %v697_v37 = vmax.f32 %v694_v35, 0.0 }
 0x4a7   : > { %699 = vrot.lane.b32.xlu0 %v697_v37, %s1534_s26  ;;  %v1103_v37 = vld [vmem:[%s1858_s14] sm:$0xff] }
 0x519   : > { %v700_v38 = vpop.permute.xlu0 %699 }
 0x51a   : > { %702 = vst.msk [vmem:[#allocation2] sm:$0xff] %vm498_vm1, %v700_v38 }
 0x521   : > { %v703_v39 = vld [vmem:[#allocation2] sm:$0xff] }
 0x522   : > { %707 = vrot.lane.b32.xlu0 %v703_v39, %s1543_s20  ;;  %705 = vrot.lane.b32.xlu1 %v703_v39, %s1541_s16 }
 0x594   : > { %v708_v40 = vpop.permute.xlu0 %707  ;;  %v706_v41 = vpop.permute.xlu1 %705 }
 0x595   : > { %718 = vrot.lane.b32.xlu0 %v708_v40, %s1541_s16  ;;  %716 = vrot.lane.b32.xlu1 %v706_v41, %s1541_s16 }
 0x599   : > { %713 = vperm.xlu1 %1452, %v710_v42   ;;  %v1102_v42 = vld [vmem:[%s1851_s7] sm:$0xff] }
 0x607   : > { %v717_v43 = vpop.permute.xlu1 %716  ;;  %v719_v46 = vpop.permute.xlu0 %718 }
 0x608   : > { %v1382_v44 = vpack.c.bf16 %v717_v43, %v706_v41 }
 0x60a   : > { %1383 = vmatpush3.bf16.msra.mxu0 %v1382_v44 }
 0x60b   : > { %1334 = vmatprep.subr.mxu0 %v1533_v0 }
 0x60e   : > { %1335 = vmatpush3.msra.mxu0 %v719_v46 }
 0x60f   : > { %1337 = vmatmul.mubr.msk.f32.vlgmr.msra.gmra.mrb[2].mxu0 %vm522_vm3, %v709_v45  ;;  %1387 = vmatprep.subr.bf16.mxu0 %v1537_v4 }
 0x610   : > { %1354 = vmatprep.mubr.msk.f32.mxu0 %vm1538_vm2, %v1533_v0 }
 0x618   : > { %v714_v47 = vpop.permute.xlu1 %713 }
 0x6e2   : > { %v792_v48 = vpop.f32.mrb[2].mxu0 }
 0x6e3   : > { %v793_v49 = vadd.f32 %v792_v48, %v714_v47  ;;  %v1338_v50 = vpop.f32.mrb[3].mxu0 }
 0x6e5   : > { %v796_v51 = vmax.f32 %v793_v49, 0.0 }
 0x6e7   : > { %798 = vrot.lane.b32.xlu0 %v796_v51, %s1534_s26 }
 0x759   : > { %v799_v52 = vpop.permute.xlu0 %798 }
 0x75a   : > { %801 = vst.msk [vmem:[#allocation3] sm:$0xff] %vm498_vm1, %v799_v52 }
 0x761   : > { %v802_v53 = vld [vmem:[#allocation3] sm:$0xff] }
 0x762   : > { %807 = vrot.lane.b32.xlu0 %v802_v53, %s1544_s17  ;;  %804 = vrot.lane.b32.xlu1 %v802_v53, %s1543_s20 }
 0x766   : > { %814 = vperm.xlu1 %1452, %v811_v54  }
 0x7d4   : > { %v805_v55 = vpop.permute.xlu1 %804  ;;  %v808_v58 = vpop.permute.xlu0 %807 }
 0x7d5   : > { %v1385_v56 = vpack.c.bf16 %v805_v55, %v802_v53 }
 0x7d7   : > { %1386 = vmatpush3.bf16.msra.mxu1 %v1385_v56 }
 0x7d8   : > { %1343 = vmatprep.subr.mxu1 %v1533_v0 }
 0x7db   : > { %1344 = vmatpush3.msra.mxu1 %v808_v58 }
 0x7dc   : > { %1346 = vmatmul.mubr.msk.f32.vlgmr.msra.gmra.mrb[2].mxu1 %vm522_vm3, %v810_v57  ;;  %1390 = vmatprep.subr.bf16.mxu1 %v1537_v4 }
 0x7dd   : > { %1363 = vmatprep.mubr.msk.f32.mxu1 %vm1538_vm2, %v1533_v0 }
 0x7e5   : > { %v815_v59 = vpop.permute.xlu1 %814 }
 0x8af   : > { %v886_v60 = vpop.f32.mrb[2].mxu1 }
 0x8b0   : > { %v887_v61 = vadd.f32 %v886_v60, %v815_v59  ;;  %v1347_v62 = vpop.f32.mrb[3].mxu1 }
 0x8b2   : > { %v890_v63 = vmax.f32 %v887_v61, 0.0 }
 0x8b4   : > { %892 = vrot.lane.b32.xlu0 %v890_v63, %s1534_s26 }
 0x926   : > { %v893_v1 = vpop.permute.xlu0 %892 }
 0x927   : > { %895 = vst.msk [vmem:[#allocation2] sm:$0xff] %vm498_vm1, %v893_v1 }
 0x92e   : > { %v896_v2 = vld [vmem:[#allocation2] sm:$0xff] }
 0x92f   : > { %900 = vrot.lane.b32.xlu0 %v896_v2, %s1543_s20  ;;  %898 = vrot.lane.b32.xlu1 %v896_v2, %s1541_s16  ;;  %s1880_s20 = smov 127  }
 0x9a1   : > { %v901_v3 = vpop.permute.xlu0 %900  ;;  %v899_v5 = vpop.permute.xlu1 %898 }
 0x9a2   : > { %911 = vrot.lane.b32.xlu0 %v901_v3, %s1541_s16  ;;  %909 = vrot.lane.b32.xlu1 %v899_v5, %s1541_s16 }
 0x9a6   : > { %906 = vperm.xlu1 %1452, %v903_v6  }
 0xa14   : > { %v910_v7 = vpop.permute.xlu1 %909  ;;  %v912_v10 = vpop.permute.xlu0 %911 }
 0xa15   : > { %v1388_v8 = vpack.c.bf16 %v910_v7, %v899_v5 }
 0xa17   : > { %1389 = vmatpush3.bf16.msra.mxu0 %v1388_v8 }
 0xa18   : > { %1352 = vmatprep.subr.mxu0 %v1533_v0 }
 0xa1b   : > { %1353 = vmatpush3.msra.mxu0 %v912_v10 }
 0xa1c   : > { %1355 = vmatmul.mubr.msk.f32.vlgmr.msra.gmra.mrb[4].mxu0 %vm522_vm3, %v902_v9  ;;  %1393 = vmatprep.subr.bf16.mxu0 %v1537_v4 }
 0xa1d   : > { %1372 = vmatprep.mubr.msk.f32.mxu0 %vm1538_vm2, %v1533_v0 }
 0xa25   : > { %v907_v11 = vpop.permute.xlu1 %906 }
 0xaef   : > { %v985_v12 = vpop.f32.mrb[4].mxu0 }
 0xaf0   : > { %v986_v13 = vadd.f32 %v985_v12, %v907_v11  ;;  %v1356_v14 = vpop.f32.mrb[5].mxu0 }
 0xaf2   : > { %v989_v15 = vmax.f32 %v986_v13, 0.0 }
 0xaf4   : > { %991 = vrot.lane.b32.xlu0 %v989_v15, %s1534_s26 }
 0xb66   : > { %v992_v16 = vpop.permute.xlu0 %991 }
 0xb67   : > { %994 = vst.msk [vmem:[#allocation3] sm:$0xff] %vm498_vm1, %v992_v16 }
 0xb6e   : > { %v995_v17 = vld [vmem:[#allocation3] sm:$0xff] }
 0xb6f   : > { %999 = vrot.lane.b32.xlu0 %v995_v17, %s1541_s16  ;;  %997 = vrot.lane.b32.xlu1 %v995_v17, %s1878_s23  ;;  %s483_s16 = sand.u32 1, %s1523_s19  }
 0xb70   : > { %s1271_s30 = sshll.u32 %s483_s16, 3 }
 0xbe1   : > { %v1000_v18 = vpop.permute.xlu0 %999  ;;  %v998_v4 = vpop.permute.xlu1 %997 }
 0xbe2   : > { %v1458_v19 = vpack.i.bf16 %v998_v4, %v995_v17  ;;  %1012 = vrot.lane.b32.xlu0 %v1000_v18, %s1879_s25 }
 0xbe4   : > { %1459 = vrot.lane.b32.xlu1 %v1458_v19, %s1879_s25  ;;  %s1881_s25 = smov 121  }
 0xbe8   : > { %1005 = vperm.xlu1 %1452, %v1002_v20  }
 0xc54   : > { %v1013_v26 = vpop.permute.xlu0 %1012 }
 0xc56   : > { %v1460_v21 = vpop.permute.xlu1 %1459 }
 0xc57   : > { %v1462_v22 = vunpack.i.h.bf16 %v1460_v21  ;;  %v1461_v23 = vunpack.i.l.bf16 %v1460_v21 }
 0xc59   : > { %v1391_v24 = vpack.c.bf16 %v1462_v22, %v1461_v23 }
 0xc5b   : > { %1392 = vmatpush3.bf16.msra.mxu1 %v1391_v24 }
 0xc5c   : > { %1361 = vmatprep.subr.mxu1 %v1533_v0 }
 0xc5f   : > { %1362 = vmatpush3.msra.mxu1 %v1013_v26 }
 0xc60   : > { %1364 = vmatmul.mubr.msk.f32.vlgmr.msra.gmra.mrb[4].mxu1 %vm522_vm3, %v1001_v25 }
 0xc67   : > { %v1006_v27 = vpop.permute.xlu1 %1005 }
 0xd33   : > { %v1086_v28 = vpop.f32.mrb[4].mxu1 }
 0xd34   : > { %v1087_v29 = vadd.f32 %v1086_v28, %v1006_v27  ;;  %v1365_v30 = vpop.f32.mrb[5].mxu1 }
 0xd36   : > { %v1090_v31 = vmax.f32 %v1087_v29, 0.0 }
 0xd38   : > { %1092 = vrot.lane.b32.xlu0 %v1090_v31, %s1534_s26 }
 0xdaa   : > { %v1093_v32 = vpop.permute.xlu0 %1092 }
 0xdab   : > { %1095 = vst.msk [vmem:[#allocation2] sm:$0xff] %vm498_vm1, %v1093_v32 }
 0xdb2   : > { %v1096_v33 = vld [vmem:[#allocation2] sm:$0xff] }
 0xdb3   : > { %1100 = vrot.lane.b32.xlu0 %v1096_v33, %s1878_s23  ;;  %1098 = vrot.lane.b32.xlu1 %v1096_v33, %s1880_s20  ;;  %s1281_s20 = sshll.u32 %s1647_s22, 7  ;;  %s1195_s23 = scalar_lea.sflag [#allocation5], %s483_s16 }
 0xdb4   : > { %s1802_s26 = scalar_lea.hbm %s1859_s15, %s1281_s20  ;;  %s1545_s22 = smov [#allocation4]  }
 0xe25   : > { %v1101_v34 = vpop.permute.xlu0 %1100  ;;  %v1099_v35 = vpop.permute.xlu1 %1098 }
 0xe26   : > { %v1463_v36 = vpack.i.bf16 %v1099_v35, %v1096_v33  ;;  %1113 = vrot.lane.b32.xlu0 %v1101_v34, %s1881_s25 }
 0xe28   : > { %1464 = vrot.lane.b32.xlu1 %v1463_v36, %s1881_s25  ;;  %s485_s25 = scalar_lea.vmem [#allocation4], %s1271_s30  ;;  %s1473_s30 = sshll.u32 %s1545_s22, 4  ;;  %s1474_s30 = int_to_ptr.vmem [resolvable:$false] %s1473_s30 }
 0xe29   : > { %s1208_s27 = sshll.u32 %s485_s25, 4  ;;  %s1475_s2 = scalar_lea.vmem %s1474_s30, 256  ;;  %s1804_s27 = int_to_ptr.vmem [resolvable:$true] %s1208_s27 }
 0xe2a   : > { %s1469_s1 = scalar_lea.vmem %s1804_s27, 128  ;;  %p1476_p0 = scmp.lt.s32.totalorder %s1804_s27, %s1474_s30 }
 0xe2b   : > { %p1470_p11 = scmp.ne.s32.totalorder %s1804_s27, %s1469_s1  ;;  %p1477_p1 = scmp.lt.s32.totalorder %s1475_s2, %s1469_s1 }
 0xe2c   : > { %1106 = vperm.xlu1 %1452, %v1103_v37  }
 0xe2d   : > { %p1471_p12 = pnand %p1470_p11, %p1664_p5  ;;  %p1478_p2 = por %p1477_p1, %p1476_p0 }
 0xe2f   : > { %p1472_p13 = pneg %p1471_p12 }
 0xe31   : > { %p1479_p3 = pnand %p1478_p2, %p1472_p13 }
 0xe98   : > { %v1114_v43 = vpop.permute.xlu0 %1113 }
 0xe9a   : > { %v1465_v38 = vpop.permute.xlu1 %1464 }
 0xe9b   : > { %v1467_v39 = vunpack.i.h.bf16 %v1465_v38  ;;  %v1466_v40 = vunpack.i.l.bf16 %v1465_v38 }
 0xe9d   : > { %v1394_v41 = vpack.c.bf16 %v1467_v39, %v1466_v40 }
 0xe9f   : > { %1395 = vmatpush3.bf16.msra.mxu0 %v1394_v41 }
 0xea0   : > { %1370 = vmatprep.subr.mxu0 %v1533_v0 }
 0xea3   : > { %1371 = vmatpush3.msra.mxu0 %v1114_v43 }
 0xea4   : > { %1373 = vmatmul.mubr.msk.f32.vlgmr.msra.gmra.mrb[6].mxu0 %vm522_vm3, %v1102_v42 }
 0xeab   : > { %v1107_v44 = vpop.permute.xlu1 %1106 }
 0xf77   : > { %v1187_v45 = vpop.f32.mrb[6].mxu0 }
 0xf78   : > { %v1188_v46 = vadd.f32 %v1187_v45, %v1107_v44  ;;  %v1374_v47 = vpop.f32.mrb[7].mxu0 }
 0xf7a   : > { %v1191_v0 = vmax.f32 %v1188_v46, 0.0 }
 0xf7c   : > { %1193 = vst.msk [vmem:[%s485_s25] sm:$0xff] %vm1192_vm4, %v1191_v0 }
 0xf7d   : > { %1482 = shalt.err (!%p1479_p3)
}
 0xf7e   : > { %s1483_s0 = scalar_lea.hbm %s1802_s26, 128  ;;  %s1487_s25 = scalar_lea.hbm %s1859_s15, 256 }
 0xf7f   : > { %p1484_p4 = scmp.ne.s32.totalorder %s1802_s26, %s1483_s0  ;;  %p1488_p9 = scmp.lt.u32.totalorder %s1802_s26, %s1859_s15 }
 0xf80   : > { %p1489_p10 = scmp.lt.u32.totalorder %s1487_s25, %s1483_s0  ;;  %p1491_p12 = scmp.lt.u32.totalorder %s1483_s0, %s1802_s26 }
 0xf81   : > { %p1485_p7 = pnand %p1484_p4, %p1664_p5 }
 0xf82   : > { %p1490_p11 = por %p1489_p10, %p1488_p9 }
 0xf83   : > { %p1486_p8 = pneg %p1485_p7 }
 0xf84   : > { %p1492_p13 = por %p1491_p12, %p1490_p11 }
 0xf86   : > { %p1493_p0 = pnand %p1492_p13, %p1486_p8 }
 0xf88   : > { %1496 = shalt.err (!%p1493_p0)
}
 0xf89   : > { %1396 = dma.vmem_to_hbm [thread:$0]  (%p1664_p5), %s1804_s27, 128, %s1802_s26, %s1195_s23  }
 0xf8a PF: > { %p1402_p1 = scmp.ge.s32.totalorder %s1531_s21, 2  ;;  %s1220_s1 = sand.u32 1, %s1519_s18  }
 0xf8b   : > { %s1221_s2 = scalar_lea.sflag [#allocation5], %s1220_s1 }
 0xf8c   : > { %p1399_p2 = pnand %p1402_p1, %p1668_p6 }
 0xf8e   : > { %1514 = dma.done.wait (!%p1399_p2), %s1221_s2, 128  }
 0xf8f   : > { %1516 = vsyncadd (!%p1399_p2), %s1221_s2, 4294967168  ;;  %s1882_s30 = sld [smem:[#allocation7_spill]]  ;;  %s1883_s20 = sld [smem:[#allocation8_spill]] }
 0xf90   : > { %p25_p3 = scmp.ge.s32.totalorder %s1651_s24, 4   ;;  %s1884_s18 = smov %s1523_s19 }
 0xf91   : > { %s1886_s21 = smov %s1651_s24 }
 0xf92   :  { %27 = sbr.rel (!%p25_p3) target bundleno = 7 (0x7), region = 115 }
 0xf95   : > { %s1885_s19 = smov %s1882_s30 }
 0xf99   :  { %1226 = vsyncpa [#allocation5], 1 }
 0xf9a   :  { %1228 = vsyncpa [#allocation5 + $0x1], 1 }

</bundles_post_ra>
